<compile_context>
chip_gen: v6e
topology: v6e:2x2x1
jax: 0.10.0
libtpu: 0.0.40
codegen_flags: <defaults>
</compile_context>

<pallas_src>
import functools
import math

import jax
import jax.numpy as jnp
from jax.experimental import pallas as pl
from jax.experimental.pallas import tpu as pltpu


# --------------------------------------------------------------------------
# Tiled matmul (MXU, bf16 operands, f32 accumulate)
# --------------------------------------------------------------------------

def _round_up(x, m):
    return ((x + m - 1) // m) * m


def _pick_tile(dim, unit, max_block):
    """Return (padded_dim, block) obeying the (8,128)/full-dim rule."""
    if dim <= max_block:
        p = _round_up(dim, unit)
        return p, p
    return _round_up(dim, max_block), max_block


def _matmul_kernel(a_ref, b_ref, o_ref, acc_ref):
    @pl.when(pl.program_id(2) == 0)
    def _():
        acc_ref[...] = jnp.zeros_like(acc_ref)

    acc_ref[...] += jnp.dot(a_ref[...], b_ref[...],
                            preferred_element_type=jnp.float32)

    @pl.when(pl.program_id(2) == pl.num_programs(2) - 1)
    def _():
        o_ref[...] = acc_ref[...]


@jax.jit
def pallas_matmul(a, b):
    """(M, K) @ (K, N) -> (M, N) f32; bf16 operands, tiled over M/N/K."""
    M, K = a.shape
    _, N = b.shape
    Mp, bm = _pick_tile(M, 8, 256)
    Kp, bk = _pick_tile(K, 128, 512)
    Np, bn = _pick_tile(N, 128, 256)
    a = jnp.pad(a.astype(jnp.bfloat16), ((0, Mp - M), (0, Kp - K)))
    b = jnp.pad(b.astype(jnp.bfloat16), ((0, Kp - K), (0, Np - N)))
    out = pl.pallas_call(
        _matmul_kernel,
        out_shape=jax.ShapeDtypeStruct((Mp, Np), jnp.float32),
        grid=(Mp // bm, Np // bn, Kp // bk),
        in_specs=[pl.BlockSpec((bm, bk), lambda i, j, k: (i, k)),
                  pl.BlockSpec((bk, bn), lambda i, j, k: (k, j))],
        out_specs=pl.BlockSpec((bm, bn), lambda i, j, k: (i, j)),
        scratch_shapes=[pltpu.VMEM((bm, bn), jnp.float32)],
        compiler_params=pltpu.CompilerParams(
            dimension_semantics=("parallel", "parallel", "arbitrary")),
    )(a, b)
    return out[:M, :N]


# --------------------------------------------------------------------------
# Conv1d (im2col inside the kernel, padding in-kernel, bf16 MXU operands)
# --------------------------------------------------------------------------

def _conv1d_kernel(x_ref, w_ref, b_ref, o_ref, *, K, dilation, pad):
    Tout = o_ref.shape[2]
    Cin = x_ref.shape[1]
    x = x_ref[0]                                        # (Cin, T) bf16
    if pad > 0:
        z = jnp.zeros((Cin, pad), x.dtype)
        x = jnp.concatenate([z, x, z], axis=1)
    if K == 1:
        cols = x                                        # (Cin, Tout)
    else:
        cols = jnp.concatenate(
            [x[:, k * dilation: k * dilation + Tout] for k in range(K)],
            axis=0)                                     # (K*Cin, Tout)
    o_ref[0] = (jnp.dot(w_ref[...], cols,
                        preferred_element_type=jnp.float32)
                + b_ref[...])                           # (Cout,1) broadcast


@functools.partial(jax.jit, static_argnames=("dilation", "padding"))
def pallas_conv1d(x, w, b=None, *, dilation=1, padding=0):
    """Conv1d, torch semantics.  x:(B,Cin,T)  w:(Cout,Cin,K)  b:(Cout,)."""
    B, Cin, T = x.shape
    Cout, _, K = w.shape
    Tout = T + 2 * padding - dilation * (K - 1)
    if b is None:
        b = jnp.zeros((Cout,), jnp.float32)
    b2 = jnp.asarray(b, jnp.float32).reshape(Cout, 1)
    w2d = jnp.transpose(w, (0, 2, 1)).reshape(Cout, K * Cin).astype(jnp.bfloat16)
    xb = x.astype(jnp.bfloat16)
    kern = functools.partial(_conv1d_kernel, K=K, dilation=dilation, pad=padding)
    return pl.pallas_call(
        kern,
        out_shape=jax.ShapeDtypeStruct((B, Cout, Tout), jnp.float32),
        grid=(B,),
        in_specs=[pl.BlockSpec((1, Cin, T), lambda i: (i, 0, 0)),
                  pl.BlockSpec((Cout, K * Cin), lambda i: (0, 0)),
                  pl.BlockSpec((Cout, 1), lambda i: (0, 0))],
        out_specs=pl.BlockSpec((1, Cout, Tout), lambda i: (i, 0, 0)),
        compiler_params=pltpu.CompilerParams(
            dimension_semantics=("parallel",),
            vmem_limit_bytes=32 * 1024 * 1024),
    )(xb, w2d, b2)


@functools.partial(jax.jit, static_argnames=("stride", "padding"))
def pallas_conv_transpose1d(x, w, b, *, stride, padding):
    """ConvTranspose1d (torch layout w:(Cin,Cout,K)) via polyphase decomposition.

    Per output phase r, only taps k = r, r+stride, ... contribute, so each
    phase is a small dense conv on the *un*-dilated input; phases are then
    interleaved.  No zero-stuffed input is ever materialized.
    """
    B, Cin, T = x.shape
    _, Cout, K = w.shape
    Tout = (T - 1) * stride - 2 * padding + K
    phases = []
    for r in range(stride):
        taps = list(range(r, K, stride))
        Kr = len(taps)
        if Kr == 0:
            y_r = jnp.broadcast_to(
                jnp.asarray(b, jnp.float32).reshape(1, Cout, 1), (B, Cout, T))
        else:
            w_r = jnp.flip(w[:, :, taps], axis=2)           # (Cin, Cout, Kr)
            w_r = jnp.transpose(w_r, (1, 0, 2))             # (Cout, Cin, Kr)
            y_r = pallas_conv1d(x, w_r, b, padding=Kr - 1)  # (B, Cout, T+Kr-1)
        phases.append(y_r)
    max_len = max(p_.shape[2] for p_ in phases)
    phases = [jnp.pad(p_, ((0, 0), (0, 0), (0, max_len - p_.shape[2])))
              for p_ in phases]
    full = jnp.stack(phases, axis=-1).reshape(B, Cout, max_len * stride)
    return full[:, :, padding: padding + Tout]


# --------------------------------------------------------------------------
# Fused attention core: QK^T + rel bias + mask + softmax + P@V  per (b*h)
# --------------------------------------------------------------------------

def _attn_kernel(q_ref, k_ref, v_ref, bias_ref, mask_ref, o_ref, p_ref):
    q = q_ref[0]                                       # (T, Dh) bf16
    k = k_ref[0]
    v = v_ref[0]
    s = jax.lax.dot_general(q, k, (((1,), (1,)), ((), ())),
                            preferred_element_type=jnp.float32)   # (T, T) f32
    s = s + bias_ref[0]
    s = jnp.where(mask_ref[0] > 0.0, s, -1e4)
    m = jnp.max(s, axis=-1, keepdims=True)
    e = jnp.exp(s - m)
    denom = jnp.sum(e, axis=-1, keepdims=True)
    p = e / denom
    p_ref[0] = p
    o_ref[0] = jnp.dot(p.astype(v.dtype), v,
                       preferred_element_type=jnp.float32)


@functools.partial(jax.jit, static_argnames=("n_heads",))
def pallas_attention(q, k, v, bias, mask, *, n_heads):
    """q,k,v:(G,T,Dh)  bias:(G,T,T)  mask:(B,T,T) with G=B*n_heads."""
    G, T, Dh = q.shape
    qb = q.astype(jnp.bfloat16)
    kb = k.astype(jnp.bfloat16)
    vb = v.astype(jnp.bfloat16)
    return pl.pallas_call(
        _attn_kernel,
        out_shape=(jax.ShapeDtypeStruct((G, T, Dh), jnp.float32),
                   jax.ShapeDtypeStruct((G, T, T), jnp.float32)),
        grid=(G,),
        in_specs=[pl.BlockSpec((1, T, Dh), lambda g: (g, 0, 0)),
                  pl.BlockSpec((1, T, Dh), lambda g: (g, 0, 0)),
                  pl.BlockSpec((1, T, Dh), lambda g: (g, 0, 0)),
                  pl.BlockSpec((1, T, T), lambda g: (g, 0, 0)),
                  pl.BlockSpec((1, T, T), lambda g: (g // n_heads, 0, 0))],
        out_specs=(pl.BlockSpec((1, T, Dh), lambda g: (g, 0, 0)),
                   pl.BlockSpec((1, T, T), lambda g: (g, 0, 0))),
        compiler_params=pltpu.CompilerParams(
            dimension_semantics=("parallel",),
            vmem_limit_bytes=32 * 1024 * 1024),
    )(qb, kb, vb, bias.astype(jnp.float32), mask.astype(jnp.float32))


# --------------------------------------------------------------------------
# Fused WaveNet block: grid=(B, n_layers); x / skip live in VMEM scratch
# --------------------------------------------------------------------------

def _wn_kernel(x0_ref, mask_ref, ga_ref, gb_ref, wa_ref, wb_ref, ba_ref, bb_ref,
               wres_ref, bres_ref, wskip_ref, bskip_ref, out_ref, x_s, skip_s,
               *, K, pad, n_layers):
    layer = pl.program_id(1)

    @pl.when(layer == 0)
    def _():
        x_s[...] = x0_ref[0].astype(jnp.float32)
        skip_s[...] = jnp.zeros_like(skip_s)

    H, T = x_s.shape
    mask = mask_ref[0]                                   # (1, T)
    x = x_s[...]
    xb = x.astype(jnp.bfloat16)
    if pad > 0:
        z = jnp.zeros((H, pad), jnp.bfloat16)
        xb = jnp.concatenate([z, xb, z], axis=1)
    cols = jnp.concatenate([xb[:, k:k + T] for k in range(K)], axis=0)  # (K*H,T)

    # gated unit: halves computed with separate weight refs so no
    # sublane-crossing slice of the conv output is needed.
    ta = (jnp.dot(wa_ref[0], cols, preferred_element_type=jnp.float32)
          + ba_ref[...] + ga_ref[0])
    tb = (jnp.dot(wb_ref[0], cols, preferred_element_type=jnp.float32)
          + bb_ref[...] + gb_ref[0])
    acts = (jnp.tanh(ta) * jax.nn.sigmoid(tb)).astype(jnp.bfloat16)

    res = (jnp.dot(wres_ref[0], acts, preferred_element_type=jnp.float32)
           + bres_ref[...])
    skip = (jnp.dot(wskip_ref[0], acts, preferred_element_type=jnp.float32)
            + bskip_ref[...])

    x_s[...] = (x + res) * mask
    skip_s[...] = skip_s[...] + skip

    @pl.when(layer == n_layers - 1)
    def _():
        out_ref[0] = skip_s[...] * mask


@functools.partial(jax.jit, static_argnames=("kernel_size", "n_layers"))
def wn_fused(x, x_mask, g, p, *, kernel_size, n_layers):
    """Full WaveNet block (dilation_rate == 1) fused into one pallas_call."""
    B, H, T = x.shape
    K = kernel_size
    pad = (K - 1) // 2

    g_cond = pallas_conv1d(g, p['cond_w'], p['cond_b'])          # (B, 2H*L, 1)
    gc = g_cond.reshape(B, n_layers, 2 * H)
    ga = gc[:, :, :H].reshape(B, n_layers * H, 1)
    gb = gc[:, :, H:].reshape(B, n_layers * H, 1)

    wa_l, wb_l, ba_l, bb_l = [], [], [], []
    wres_l, bres_l, wskip_l, bskip_l = [], [], [], []
    for i in range(n_layers):
        w = p['in_w'][i]                                # (2H, H, K)
        bvec = p['in_b'][i]                             # (2H,)
        wa_l.append(jnp.transpose(w[:H], (0, 2, 1)).reshape(H, K * H))
        wb_l.append(jnp.transpose(w[H:], (0, 2, 1)).reshape(H, K * H))
        ba_l.append(bvec[:H])
        bb_l.append(bvec[H:])
        rs_w = p['rs_w'][i][:, :, 0]                    # (rs_out, H)
        rs_b = p['rs_b'][i]
        if i < n_layers - 1:
            wres_l.append(rs_w[:H]); bres_l.append(rs_b[:H])
            wskip_l.append(rs_w[H:]); bskip_l.append(rs_b[H:])
        else:                                            # last layer: skip only
            wres_l.append(jnp.zeros((H, H), jnp.float32))
            bres_l.append(jnp.zeros((H,), jnp.float32))
            wskip_l.append(rs_w); bskip_l.append(rs_b)

    wa = jnp.stack(wa_l).astype(jnp.bfloat16)            # (L, H, K*H)
    wb = jnp.stack(wb_l).astype(jnp.bfloat16)
    ba = jnp.concatenate(ba_l).reshape(n_layers * H, 1).astype(jnp.float32)
    bb = jnp.concatenate(bb_l).reshape(n_layers * H, 1).astype(jnp.float32)
    wres = jnp.stack(wres_l).astype(jnp.bfloat16)         # (L, H, H)
    bres = jnp.concatenate(bres_l).reshape(n_layers * H, 1).astype(jnp.float32)
    wskip = jnp.stack(wskip_l).astype(jnp.bfloat16)
    bskip = jnp.concatenate(bskip_l).reshape(n_layers * H, 1).astype(jnp.float32)

    kern = functools.partial(_wn_kernel, K=K, pad=pad, n_layers=n_layers)
    return pl.pallas_call(
        kern,
        out_shape=jax.ShapeDtypeStruct((B, H, T), jnp.float32),
        grid=(B, n_layers),
        in_specs=[
            pl.BlockSpec((1, H, T), lambda b, l: (b, 0, 0)),      # x0 (bf16)
            pl.BlockSpec((1, 1, T), lambda b, l: (b, 0, 0)),      # mask
            pl.BlockSpec((1, H, 1), lambda b, l: (b, l, 0)),      # g tanh half
            pl.BlockSpec((1, H, 1), lambda b, l: (b, l, 0)),      # g sigm half
            pl.BlockSpec((1, H, K * H), lambda b, l: (l, 0, 0)),  # wa
            pl.BlockSpec((1, H, K * H), lambda b, l: (l, 0, 0)),  # wb
            pl.BlockSpec((H, 1), lambda b, l: (l, 0)),            # ba
            pl.BlockSpec((H, 1), lambda b, l: (l, 0)),            # bb
            pl.BlockSpec((1, H, H), lambda b, l: (l, 0, 0)),      # wres
            pl.BlockSpec((H, 1), lambda b, l: (l, 0)),            # bres
            pl.BlockSpec((1, H, H), lambda b, l: (l, 0, 0)),      # wskip
            pl.BlockSpec((H, 1), lambda b, l: (l, 0)),            # bskip
        ],
        out_specs=pl.BlockSpec((1, H, T), lambda b, l: (b, 0, 0)),
        scratch_shapes=[pltpu.VMEM((H, T), jnp.float32),
                        pltpu.VMEM((H, T), jnp.float32)],
        compiler_params=pltpu.CompilerParams(
            dimension_semantics=("parallel", "arbitrary"),
            vmem_limit_bytes=32 * 1024 * 1024),
    )(x.astype(jnp.bfloat16), x_mask.astype(jnp.float32), ga, gb,
      wa, wb, ba, bb, wres, bres, wskip, bskip)


# --------------------------------------------------------------------------
# Plain-JAX glue (masks, norms, relative-position reshuffles)
# --------------------------------------------------------------------------

def sequence_mask(lengths, max_len):
    pos = jnp.arange(max_len)[None, :]
    return (pos < lengths[:, None]).astype(jnp.float32)


def layer_norm_c(x, gamma, beta, eps=1e-5):
    # x: (B, C, T); normalize over channel dim (torch LayerNorm over C)
    mean = jnp.mean(x, axis=1, keepdims=True)
    var = jnp.var(x, axis=1, keepdims=True)
    xn = (x - mean) * jax.lax.rsqrt(var + eps)
    return xn * gamma[None, :, None] + beta[None, :, None]


def get_relative_embeddings(rel_emb, length, window_size):
    pad_length = max(length - (window_size + 1), 0)
    slice_start = max(window_size + 1 - length, 0)
    slice_end = slice_start + 2 * length - 1
    if pad_length > 0:
        rel_emb = jnp.pad(rel_emb, ((0, 0), (pad_length, pad_length), (0, 0)))
    return rel_emb[:, slice_start:slice_end]


def rel_to_abs(x):
    B, H, L, _ = x.shape
    x = jnp.pad(x, ((0, 0), (0, 0), (0, 0), (0, 1)))
    x_flat = x.reshape(B, H, L * 2 * L)
    x_flat = jnp.pad(x_flat, ((0, 0), (0, 0), (0, L - 1)))
    return x_flat.reshape(B, H, L + 1, 2 * L - 1)[:, :, :L, L - 1:]


def abs_to_rel(x):
    B, H, L, _ = x.shape
    x = jnp.pad(x, ((0, 0), (0, 0), (0, 0), (0, L - 1)))
    x_flat = x.reshape(B, H, L * L + L * (L - 1))
    x_flat = jnp.pad(x_flat, ((0, 0), (0, 0), (L, 0)))
    return x_flat.reshape(B, H, L, 2 * L)[:, :, :, 1:]


# --------------------------------------------------------------------------
# Sub-modules
# --------------------------------------------------------------------------

def multi_head_attention(x, attn_mask, p, n_heads, window_size=10):
    B, C, T = x.shape
    k_ch = C // n_heads
    q = pallas_conv1d(x, p['wq'], p['bq'])
    k = pallas_conv1d(x, p['wk'], p['bk'])
    v = pallas_conv1d(x, p['wv'], p['bv'])

    def to_heads(t):                                     # (B,C,T)->(B*H,T,k_ch)
        return (t.reshape(B, n_heads, k_ch, T)
                 .transpose(0, 1, 3, 2)
                 .reshape(B * n_heads, T, k_ch))

    qh, kh, vh = to_heads(q), to_heads(k), to_heads(v)
    qs = qh / math.sqrt(k_ch)

    # relative-key additive bias (rel_to_abs shuffle stays in JAX)
    rel_k = get_relative_embeddings(p['emb_rel_k'], T, window_size)  # (1,2T-1,k)
    rel_logits = pallas_matmul(qs.reshape(B * n_heads * T, k_ch),
                               jnp.transpose(rel_k[0]))              # (BHT,2T-1)
    bias = rel_to_abs(rel_logits.reshape(B, n_heads, T, 2 * T - 1))
    bias = bias.reshape(B * n_heads, T, T)

    mask = attn_mask[:, 0]                                           # (B,T,T)
    out, p_attn = pallas_attention(qs, kh, vh, bias, mask, n_heads=n_heads)

    rel_w = abs_to_rel(p_attn.reshape(B, n_heads, T, T))             # (B,H,T,2T-1)
    rel_v = get_relative_embeddings(p['emb_rel_v'], T, window_size)
    out = out.reshape(B, n_heads, T, k_ch) + pallas_matmul(
        rel_w.reshape(B * n_heads * T, 2 * T - 1),
        rel_v[0]).reshape(B, n_heads, T, k_ch)

    out = out.transpose(0, 1, 3, 2).reshape(B, C, T)
    return pallas_conv1d(out, p['wo'], p['bo'])


def ffn(x, x_mask, p, kernel_size):
    pad = kernel_size // 2          # kernel_size is odd in this config
    h = pallas_conv1d(x * x_mask, p['w1'], p['b1'], padding=pad)
    h = jax.nn.relu(h)
    h = pallas_conv1d(h * x_mask, p['w2'], p['b2'], padding=pad)
    return h * x_mask


def encoder(x, x_mask, p, n_layers, n_heads, kernel_size):
    attn_mask = x_mask[:, :, None, :] * x_mask[:, :, :, None]    # (B,1,T,T)
    x = x * x_mask
    for i in range(n_layers):
        y = multi_head_attention(x, attn_mask, p['attn'][i], n_heads)
        x = layer_norm_c(x + y, p['ln1_g'][i], p['ln1_b'][i])
        y = ffn(x, x_mask, p['ffn'][i], kernel_size)
        x = layer_norm_c(x + y, p['ln2_g'][i], p['ln2_b'][i])
    return x * x_mask


def text_encoder(phone, lengths, p, cfg):
    H = cfg['hidden_channels']
    B, T, D = phone.shape
    x = pallas_matmul(phone.reshape(B * T, D), p['emb_phone_w'].T)
    x = (x + p['emb_phone_b']).reshape(B, T, H)
    # use_f0=False -> no pitch embedding
    x = x * math.sqrt(H)
    x = jax.nn.leaky_relu(x, 0.1)
    x = x.transpose(0, 2, 1)                                     # (B, H, T)
    x_mask = sequence_mask(lengths, T)[:, None, :]
    x = encoder(x * x_mask, x_mask, p['enc'],
                cfg['n_layers'], cfg['n_heads'], cfg['kernel_size'])
    stats = pallas_conv1d(x, p['proj_w'], p['proj_b']) * x_mask
    m, logs = jnp.split(stats, 2, axis=1)
    return m, logs, x_mask


def posterior_encoder(y, y_lengths, g, p, cfg, key):
    T = y.shape[2]
    x_mask = sequence_mask(y_lengths, T)[:, None, :]
    x = pallas_conv1d(y, p['pre_w'], p['pre_b']) * x_mask
    x = wn_fused(x, x_mask, g, p['wn'], kernel_size=5, n_layers=16)
    stats = pallas_conv1d(x, p['proj_w'], p['proj_b']) * x_mask
    m, logs = jnp.split(stats, 2, axis=1)
    z = (m + jax.random.normal(key, m.shape) * jnp.exp(logs)) * x_mask
    return z, m, logs, x_mask


def flow_forward(x, x_mask, g, p, cfg):
    half = cfg['inter_channels'] // 2
    for i in range(4):                                           # n_flows = 4
        lp = p['layers'][i]
        x0, x1 = x[:, :half, :], x[:, half:, :]
        h = pallas_conv1d(x0, lp['pre_w'], lp['pre_b']) * x_mask
        h = wn_fused(h, x_mask, g, lp['wn'], kernel_size=5, n_layers=3)
        m = pallas_conv1d(h, lp['post_w'], lp['post_b']) * x_mask
        x1 = m + x1 * x_mask                                     # mean_only=True
        x = jnp.concatenate([x0, x1], axis=1)
        x = jnp.flip(x, axis=1)                                  # Flip flow
    return x


def slice_segments(x, ids_str, segment_size):
    def take(xb, s):
        return jax.lax.dynamic_slice_in_dim(xb, s, segment_size, axis=1)
    return jax.vmap(take)(x, ids_str)


def rand_slice_segments(x, x_lengths, segment_size, key):
    B = x.shape[0]
    ids_str_max = x_lengths - segment_size + 1
    rand = jax.random.uniform(key, (B,))
    ids_str = (rand * ids_str_max).astype(jnp.int32)
    return slice_segments(x, ids_str, segment_size), ids_str


def resblock1(x, p, kernel_size, dilations):
    for i, d in enumerate(dilations):
        xt = jax.nn.leaky_relu(x, 0.1)
        xt = pallas_conv1d(xt, p['c1_w'][i], p['c1_b'][i],
                           dilation=d, padding=(kernel_size * d - d) // 2)
        xt = jax.nn.leaky_relu(xt, 0.1)
        xt = pallas_conv1d(xt, p['c2_w'][i], p['c2_b'][i],
                           dilation=1, padding=(kernel_size - 1) // 2)
        x = xt + x
    return x


def generator(x, g, p, cfg):
    x = pallas_conv1d(x, p['conv_pre_w'], p['conv_pre_b'], padding=3)
    x = x + pallas_conv1d(g, p['cond_w'], p['cond_b'])           # broadcast over T
    num_kernels = len(cfg['resblock_kernel_sizes'])
    for i, (u, k) in enumerate(zip(cfg['upsample_rates'],
                                   cfg['upsample_kernel_sizes'])):
        x = jax.nn.leaky_relu(x, 0.1)
        x = pallas_conv_transpose1d(x, p['ups_w'][i], p['ups_b'][i],
                                    stride=u, padding=(k - u) // 2)
        xs = None
        for j in range(num_kernels):
            rb = p['resblocks'][i * num_kernels + j]
            r = resblock1(x, rb, cfg['resblock_kernel_sizes'][j],
                          cfg['resblock_dilation_sizes'][j])
            xs = r if xs is None else xs + r
        x = xs / num_kernels
    x = jax.nn.leaky_relu(x, 0.01)
    x = pallas_conv1d(x, p['conv_post_w'], None, padding=3)
    return jnp.tanh(x)


# --------------------------------------------------------------------------
# Full Synthesizer forward (training path: y provided, use_f0=False)
# --------------------------------------------------------------------------

def synthesizer_forward(params, phone, phone_lengths, y, y_lengths, ds,
                        key_noise, key_slice, cfg):
    g = params['emb_g'][ds][:, :, None]                          # (B, gin, 1)
    m_p, logs_p, x_mask = text_encoder(phone, phone_lengths, params['enc_p'], cfg)
    z, m_q, logs_q, y_mask = posterior_encoder(y, y_lengths, g,
                                               params['enc_q'], cfg, key_noise)
    z_p = flow_forward(z, y_mask, g, params['flow'], cfg)
    z_slice, ids_slice = rand_slice_segments(z, y_lengths,
                                             cfg['segment_size'], key_slice)
    o = generator(z_slice, g, params['dec'], cfg)
    return o, ids_slice, x_mask, y_mask, (z, z_p, m_p, logs_p, m_q, logs_q)


# --------------------------------------------------------------------------
# Deterministic parameter init (synthetic weights; no checkpoint loading)
# --------------------------------------------------------------------------

class ParamRNG:
    def __init__(self, seed):
        self.key = jax.random.PRNGKey(seed)

    def next(self):
        self.key, sub = jax.random.split(self.key)
        return sub


def init_w(shape, rng, scale=0.1):
    return scale * jax.random.normal(rng.next(), shape, dtype=jnp.float32)


def init_wn_params(rng, hidden, kernel_size, n_layers, gin):
    p = {'cond_w': init_w((2 * hidden * n_layers, gin, 1), rng),
         'cond_b': init_w((2 * hidden * n_layers,), rng),
         'in_w': [], 'in_b': [], 'rs_w': [], 'rs_b': []}
    for i in range(n_layers):
        p['in_w'].append(init_w((2 * hidden, hidden, kernel_size), rng))
        p['in_b'].append(init_w((2 * hidden,), rng))
        rs_out = 2 * hidden if i < n_layers - 1 else hidden
        p['rs_w'].append(init_w((rs_out, hidden, 1), rng))
        p['rs_b'].append(init_w((rs_out,), rng))
    return p


def init_params(rng, cfg):
    H, IC, FC = cfg['hidden_channels'], cfg['inter_channels'], cfg['filter_channels']
    nh, nl, ks = cfg['n_heads'], cfg['n_layers'], cfg['kernel_size']
    gin, spec = cfg['gin_channels'], cfg['spec_channels']
    emb_dim = cfg['text_enc_hidden_dim']
    k_ch, ws = H // nh, 10
    p = {'emb_g': init_w((cfg['spk_embed_dim'], gin), rng)}

    enc_p = {'emb_phone_w': init_w((H, emb_dim), rng),
             'emb_phone_b': init_w((H,), rng),
             'proj_w': init_w((2 * IC, H, 1), rng),
             'proj_b': init_w((2 * IC,), rng),
             'enc': {'attn': [], 'ffn': [], 'ln1_g': [], 'ln1_b': [],
                     'ln2_g': [], 'ln2_b': []}}
    for _ in range(nl):
        enc_p['enc']['attn'].append({
            'wq': init_w((H, H, 1), rng), 'bq': init_w((H,), rng),
            'wk': init_w((H, H, 1), rng), 'bk': init_w((H,), rng),
            'wv': init_w((H, H, 1), rng), 'bv': init_w((H,), rng),
            'wo': init_w((H, H, 1), rng), 'bo': init_w((H,), rng),
            'emb_rel_k': init_w((1, 2 * ws + 1, k_ch), rng, scale=k_ch ** -0.5),
            'emb_rel_v': init_w((1, 2 * ws + 1, k_ch), rng, scale=k_ch ** -0.5)})
        enc_p['enc']['ffn'].append({
            'w1': init_w((FC, H, ks), rng), 'b1': init_w((FC,), rng),
            'w2': init_w((H, FC, ks), rng), 'b2': init_w((H,), rng)})
        enc_p['enc']['ln1_g'].append(jnp.ones((H,), jnp.float32))
        enc_p['enc']['ln1_b'].append(jnp.zeros((H,), jnp.float32))
        enc_p['enc']['ln2_g'].append(jnp.ones((H,), jnp.float32))
        enc_p['enc']['ln2_b'].append(jnp.zeros((H,), jnp.float32))
    p['enc_p'] = enc_p

    p['enc_q'] = {'pre_w': init_w((H, spec, 1), rng), 'pre_b': init_w((H,), rng),
                  'wn': init_wn_params(rng, H, 5, 16, gin),
                  'proj_w': init_w((2 * IC, H, 1), rng),
                  'proj_b': init_w((2 * IC,), rng)}

    half = IC // 2
    p['flow'] = {'layers': [{'pre_w': init_w((H, half, 1), rng),
                             'pre_b': init_w((H,), rng),
                             'wn': init_wn_params(rng, H, 5, 3, gin),
                             'post_w': init_w((half, H, 1), rng, scale=0.01),
                             'post_b': jnp.zeros((half,), jnp.float32)}
                            for _ in range(4)]}

    upc = cfg['upsample_initial_channel']
    dec = {'conv_pre_w': init_w((upc, IC, 7), rng),
           'conv_pre_b': init_w((upc,), rng),
           'cond_w': init_w((upc, gin, 1), rng),
           'cond_b': init_w((upc,), rng),
           'ups_w': [], 'ups_b': [], 'resblocks': []}
    ch = upc
    for i, (u, k) in enumerate(zip(cfg['upsample_rates'],
                                   cfg['upsample_kernel_sizes'])):
        ch_out = upc // (2 ** (i + 1))
        dec['ups_w'].append(init_w((ch, ch_out, k), rng))   # torch ConvT layout
        dec['ups_b'].append(init_w((ch_out,), rng))
        for ksz, dil in zip(cfg['resblock_kernel_sizes'],
                            cfg['resblock_dilation_sizes']):
            rb = {'c1_w': [], 'c1_b': [], 'c2_w': [], 'c2_b': []}
            for _ in dil:
                rb['c1_w'].append(init_w((ch_out, ch_out, ksz), rng))
                rb['c1_b'].append(init_w((ch_out,), rng))
                rb['c2_w'].append(init_w((ch_out, ch_out, ksz), rng))
                rb['c2_b'].append(init_w((ch_out,), rng))
            dec['resblocks'].append(rb)
        ch = ch_out
    dec['conv_post_w'] = init_w((1, ch, 7), rng)
    p['dec'] = dec
    return p


# --------------------------------------------------------------------------
# Main
# --------------------------------------------------------------------------

if __name__ == "__main__":
    cfg = dict(
        spec_channels=13, segment_size=4, inter_channels=8, hidden_channels=16,
        filter_channels=32, n_heads=2, n_layers=2, kernel_size=3, p_dropout=0.0,
        resblock="1", resblock_kernel_sizes=[3],
        resblock_dilation_sizes=[[1, 3, 5]],
        upsample_rates=[2, 2], upsample_initial_channel=16,
        upsample_kernel_sizes=[4, 4],
        spk_embed_dim=4, gin_channels=8, sr=16000, use_f0=False,
        text_enc_hidden_dim=16,
    )

    prng = ParamRNG(1234)
    params = init_params(prng, cfg)

    key = jax.random.PRNGKey(0)
    kp, ky, kz, ks = jax.random.split(key, 4)

    B, T = 2, 8
    phone = jax.random.normal(kp, (B, T, cfg['text_enc_hidden_dim']), jnp.float32)
    phone_lengths = jnp.array([8, 7], jnp.int32)
    y = jax.random.normal(ky, (B, cfg['spec_channels'], T), jnp.float32)
    y_lengths = jnp.array([8, 6], jnp.int32)
    ds = jnp.array([0, 1], jnp.int32)

    o, ids_slice, x_mask, y_mask, (z, z_p, m_p, logs_p, m_q, logs_q) = \
        synthesizer_forward(params, phone, phone_lengths, y, y_lengths, ds,
                            kz, ks, cfg)

    jax.block_until_ready((o, ids_slice, x_mask, y_mask, z, z_p,
                           m_p, logs_p, m_q, logs_q))

    assert o.shape == (B, 1, cfg['segment_size'] * 2 * 2)
    assert m_p.shape == (B, cfg['inter_channels'], T)
    assert z.shape == (B, cfg['inter_channels'], T)
    assert bool(jnp.all(jnp.isfinite(o)))
    print("KERNEL_OK")
</pallas_src>

<mosaic_0001>
module attributes {stable_mosaic.version = 11 : i64} {
  func.func @_matmul_kernel(%arg0: i32, %arg1: i32, %arg2: i32, %arg3: memref<16x128xbf16, #tpu.memory_space<vmem>>, %arg4: memref<128x128xbf16, #tpu.memory_space<vmem>>, %arg5: memref<16x128xf32, #tpu.memory_space<vmem>>, %arg6: memref<16x128xf32, #tpu.memory_space<vmem>>) attributes {dimension_semantics = [#tpu.dimension_semantics<parallel>, #tpu.dimension_semantics<parallel>, #tpu.dimension_semantics<arbitrary>], iteration_bounds = array<i64: 1, 1, 1>, scalar_prefetch = 0 : i64, scratch_operands = 1 : i64, tpu.core_type = #tpu.core_type<tc>, window_params = [{transform_indices = @transform_0, window_bounds = array<i64: 16, 128>}, {transform_indices = @transform_1, window_bounds = array<i64: 128, 128>}, {transform_indices = @transform_2, window_bounds = array<i64: 16, 128>}]} {
    %c0_i32 = arith.constant 0 : i32
    %0 = arith.cmpi eq, %arg2, %c0_i32 : i32
    %1 = arith.extui %0 : i1 to i32
    %c0_i32_0 = arith.constant 0 : i32
    %2 = arith.cmpi ne, %1, %c0_i32_0 : i32
    scf.if %2 {
      %cst_10 = arith.constant 0.000000e+00 : f32
      %12 = vector.broadcast %cst_10 : f32 to vector<16x128xf32>
      %c0_11 = arith.constant 0 : index
      %c0_12 = arith.constant 0 : index
      %13 = vector.load %arg6[%c0_11, %c0_12] : memref<16x128xf32, #tpu.memory_space<vmem>>, vector<16x128xf32>
      tpu.vector_store %arg6[%c0_11, %c0_12], %12 {strides = array<i32>} : memref<16x128xf32, #tpu.memory_space<vmem>>, vector<16x128xf32>,
    } else {
    }
    %c0 = arith.constant 0 : index
    %c0_1 = arith.constant 0 : index
    %3 = vector.load %arg6[%c0, %c0_1] : memref<16x128xf32, #tpu.memory_space<vmem>>, vector<16x128xf32>
    %c0_2 = arith.constant 0 : index
    %c0_3 = arith.constant 0 : index
    %4 = vector.load %arg3[%c0_2, %c0_3] : memref<16x128xbf16, #tpu.memory_space<vmem>>, vector<16x128xbf16>
    %c0_4 = arith.constant 0 : index
    %c0_5 = arith.constant 0 : index
    %5 = vector.load %arg4[%c0_4, %c0_5] : memref<128x128xbf16, #tpu.memory_space<vmem>>, vector<128x128xbf16>
    %cst = arith.constant dense<0.000000e+00> : vector<16x128xf32>
    %6 = tpu.matmul %4, %5, %cst {dimension_numbers = #tpu.dot_dimension_numbers<[1], [0], [0], [1], [0, 0, 1, 1], [], []>} : vector<16x128xbf16>, vector<128x128xbf16>, vector<16x128xf32> -> vector<16x128xf32>
    %7 = arith.addf %3, %6 : vector<16x128xf32>
    %c0_6 = arith.constant 0 : index
    %c0_7 = arith.constant 0 : index
    %8 = vector.load %arg6[%c0_6, %c0_7] : memref<16x128xf32, #tpu.memory_space<vmem>>, vector<16x128xf32>
    tpu.vector_store %arg6[%c0_6, %c0_7], %7 {strides = array<i32>} : memref<16x128xf32, #tpu.memory_space<vmem>>, vector<16x128xf32>,
    %c0_i32_8 = arith.constant 0 : i32
    %9 = arith.cmpi eq, %arg2, %c0_i32_8 : i32
    %10 = arith.extui %9 : i1 to i32
    %c0_i32_9 = arith.constant 0 : i32
    %11 = arith.cmpi ne, %10, %c0_i32_9 : i32
    scf.if %11 {
      %c0_10 = arith.constant 0 : index
      %c0_11 = arith.constant 0 : index
      %12 = vector.load %arg6[%c0_10, %c0_11] : memref<16x128xf32, #tpu.memory_space<vmem>>, vector<16x128xf32>
      %c0_12 = arith.constant 0 : index
      %c0_13 = arith.constant 0 : index
      %13 = vector.load %arg5[%c0_12, %c0_13] : memref<16x128xf32, #tpu.memory_space<vmem>>, vector<16x128xf32>
      tpu.vector_store %arg5[%c0_12, %c0_13], %12 {strides = array<i32>} : memref<16x128xf32, #tpu.memory_space<vmem>>, vector<16x128xf32>,
    } else {
    }
    return
  }
  func.func @transform_0(%arg0: i32, %arg1: i32, %arg2: i32) -> (i32, i32) {
    %c0_i32 = arith.constant 0 : i32
    return %arg0, %arg2 : i32, i32
  }
  func.func @transform_1(%arg0: i32, %arg1: i32, %arg2: i32) -> (i32, i32) {
    %c0_i32 = arith.constant 0 : i32
    return %arg2, %arg1 : i32, i32
  }
  func.func @transform_2(%arg0: i32, %arg1: i32, %arg2: i32) -> (i32, i32) {
    %c0_i32 = arith.constant 0 : i32
    return %arg0, %arg1 : i32, i32
  }
}

</mosaic_0001>

<bundles_post_ra>
// kernel: pallas_matmul.1
= control target key start
LH: loop header
LB: loop body
LE: loop exit
PB: predicated region body
PF: predicated region fallthrough
CT: control target
= control target key end

     0   :  { %v235_v1 = vmov 0.0   ;;  %vm236_vm0 = vmmov 0   ;;  %s285_s0 = inlined_call_operand.vmem [shape: bf16[16,128], index: 0, kind: input, shape index: {}]   ;;  %s286_s1 = inlined_call_operand.vmem [shape: bf16[128,128], index: 1, kind: input, shape index: {}]   ;;  %s287_s2 = inlined_call_operand.hbm [shape: f32[16,128], index: 2, kind: output, shape index: {}]  }
   0x1   :  { %v204_v0 = vld [vmem:[%s286_s1 + $0x38] sm:$0xff]   ;;  %179 = vmatprep.subr.bf16.mxu0 %v235_v1  ;;  %v205_v2 = vld [vmem:[%s286_s1 + $0x30] sm:$0xff]   ;;  %195 = vmatprep.mubr.msk.bf16.mxu0 %vm236_vm0, %v235_v1  ;;  %v206_v3 = vld [vmem:[%s286_s1 + $0x28] sm:$0xff]  }
   0x2   :  { %180 = vmatpush3.bf16.msra.mxu0 %v204_v0 }
   0x3   :  { %181 = vmatprep.subr.bf16.mxu0 %v235_v1 }
   0x6   :  { %182 = vmatpush3.bf16.msra.mxu0 %v205_v2 }
   0x7   :  { %183 = vmatprep.subr.bf16.mxu0 %v235_v1 }
   0x8   :  { %7 = vsyncpa [#allocation4], 0  ;;  %v207_v4 = vld [vmem:[%s286_s1 + $0x20] sm:$0xff]   ;;  %v208_v5 = vld [vmem:[%s286_s1 + $0x18] sm:$0xff]   ;;  %s237_s27 = smov [#allocation3]  }
   0x9   :  { %v209_v6 = vld [vmem:[%s286_s1 + $0x10] sm:$0xff]   ;;  %v210_v7 = vld [vmem:[%s286_s1 + $0x8] sm:$0xff]   ;;  %v211_v8 = vld [vmem:[%s286_s1] sm:$0xff]   ;;  %s150_s28 = sshll.u32 %s237_s27, 4  ;;  %s151_s28 = int_to_ptr.vmem [resolvable:$true] %s150_s28 }
   0xa   :  { %184 = vmatpush3.bf16.msra.mxu0 %v206_v3  ;;  %v212_v9 = vld [vmem:[%s285_s0] sm:$0xff]   ;;  %s213_s29 = scalar_lea.vmem %s151_s28, 256  ;;  %p218_p1 = scmp.lt.s32.totalorder %s151_s28, %s151_s28 }
   0xb   :  { %185 = vmatprep.subr.bf16.mxu0 %v235_v1  ;;  %p214_p0 = scmp.ne.s32.totalorder %s151_s28, %s213_s29  ;;  %p219_p2 = scmp.lt.s32.totalorder %s213_s29, %s213_s29 }
   0xd   :  { %p220_p3 = por %p219_p2, %p218_p1 }
   0xe   :  { %186 = vmatpush3.bf16.msra.mxu0 %v207_v4 }
   0xf   :  { %187 = vmatprep.subr.bf16.mxu0 %v235_v1  ;;  %p221_p4 = pnand %p220_p3, %p214_p0 }
  0x12   :  { %188 = vmatpush3.bf16.msra.mxu0 %v208_v5 }
  0x13   :  { %189 = vmatprep.subr.bf16.mxu0 %v235_v1 }
  0x16   :  { %190 = vmatpush3.bf16.msra.mxu0 %v209_v6 }
  0x17   :  { %191 = vmatprep.subr.bf16.mxu0 %v235_v1 }
  0x1a   :  { %192 = vmatpush3.bf16.msra.mxu0 %v210_v7 }
  0x1b   :  { %193 = vmatprep.subr.bf16.mxu0 %v235_v1 }
  0x1e   :  { %194 = vmatpush3.bf16.msra.mxu0 %v211_v8 }
  0x21   :  { %196 = vmatmul.mubr.bf16.vlgmr.msra.gmra.mxu0 %v212_v9 }
  0xe1   :  { %v127_v10 = vpop.f32.mrf.mxu0 }
  0xe2   :  { %143 = vst [vmem:[#allocation3] sm:$0xff] %v127_v10 }
  0xe3   :  { %v197_v11 = vpop.f32.mrf.mxu0 }
  0xe5   :  { %v130_v12 = vpop.f32.mrf.mxu0 }
  0xe6   :  { %144 = vst [vmem:[#allocation3 + $0x8] sm:$0xff] %v130_v12 }
  0xe7   :  { %v198_v13 = vpop.f32.mrf.mxu0 }
  0xe8   :  { %224 = shalt.err (!%p221_p4)
}
  0xe9   :  { %s238_s1 = smov 128   ;;  %s239_s0 = smov 8  }
  0xea   :  { %156 = dma.vmem_to_hbm [thread:$0]  %s151_s28, 256, %s287_s2, [#allocation4], %s238_s1, %s238_s1, %s239_s0  }
  0xeb   :  { %233 = dma.done.wait [#allocation4], 256  }
  0xec   :  { %234 = vsyncadd [#allocation4], 4294967040 }
  0xed   :  { %160 = vsyncpa [#allocation4], 1 }

</bundles_post_ra>
